<compile_context>
chip_gen: v6e
topology: v6e:2x2x1
jax: 0.10.0
libtpu: 0.0.40
codegen_flags: <defaults>
</compile_context>

<pallas_src>
import functools

import jax
import jax.numpy as jnp
from jax.experimental import pallas as pl
from jax.experimental.pallas import tpu as pltpu

_LANE = 128
_SUBLANE = 8


def _round_up(n, m):
    return -(-n // m) * m


def _mlp_fused_kernel(*refs, num_args, arg_dims, num_hidden):
    """refs = (x_0..x_{A-1}, w0, b0, w1, b1, ..., w_last, b_last, o_ref).

    All weights are [in, out_padded] (already transposed, lane-padded with
    zeros), biases are [1, out_padded]. Output is [batch_tile, out_padded].
    """
    x_refs = refs[:num_args]
    wb = refs[num_args:-1]
    o_ref = refs[-1]

    # ---- layer 0: split-K over the (virtually concatenated) inputs --------
    w0_ref, b0_ref = wb[0], wb[1]
    h = None
    off = 0
    for i in range(num_args):
        d = arg_dims[i]
        part = jnp.dot(x_refs[i][...], w0_ref[off:off + d, :],
                       preferred_element_type=jnp.float32)
        h = part if h is None else h + part
        off += d
    h = h + b0_ref[...]  # bias added once per output tile

    if num_hidden > 0:
        h = jnp.maximum(h, 0.0)
        # ---- remaining hidden layers (Linear + ReLU) -----------------------
        for l in range(1, num_hidden):
            w_ref, b_ref = wb[2 * l], wb[2 * l + 1]
            h = jnp.dot(h, w_ref[...], preferred_element_type=jnp.float32)
            h = jnp.maximum(h + b_ref[...], 0.0)
        # ---- final linear (no activation) ----------------------------------
        wl_ref, bl_ref = wb[2 * num_hidden], wb[2 * num_hidden + 1]
        h = jnp.dot(h, wl_ref[...], preferred_element_type=jnp.float32)
        h = h + bl_ref[...]

    o_ref[...] = h  # f32 everywhere -> no redundant astype


class MLPPallas:
    """Pallas re-implementation of the PyTorch MLP module (fused forward)."""

    def __init__(self, input_size, output_size, layer_sizes=None,
                 init_w=0.003, key=None):
        if layer_sizes is None:
            layer_sizes = [300, 300]
        if key is None:
            key = jax.random.PRNGKey(0)

        self.input_size = int(input_size)
        self.output_size = int(output_size)

        # Raw (unpadded, transposed) params kept for reference checks.
        self.raw_hidden = []
        self.raw_last = None
        # Lane-padded params actually fed to the kernel.
        self.hidden = []   # list of (W [in_pad, out_pad], b [1, out_pad])
        self.last = None

        in_real = self.input_size
        in_padded = self.input_size  # first weight rows = raw concat width
        for next_size in layer_sizes:
            key, kw, kb = jax.random.split(key, 3)
            # PyTorch nn.Linear default init: U(-1/sqrt(in), 1/sqrt(in))
            bound = 1.0 / float(in_real) ** 0.5
            w = jax.random.uniform(kw, (next_size, in_real), jnp.float32,
                                   minval=-bound, maxval=bound)
            b = jax.random.uniform(kb, (next_size,), jnp.float32,
                                   minval=-bound, maxval=bound)
            self.raw_hidden.append((w.T, b))

            out_pad = _round_up(next_size, _LANE)
            wp = jnp.zeros((in_padded, out_pad), jnp.float32)
            wp = wp.at[:in_real, :next_size].set(w.T)
            bp = jnp.zeros((1, out_pad), jnp.float32)
            bp = bp.at[0, :next_size].set(b)
            self.hidden.append((wp, bp))

            in_real = next_size
            in_padded = out_pad

        # last_fc: weight/bias ~ U(-init_w, init_w)
        key, kw, kb = jax.random.split(key, 3)
        w = jax.random.uniform(kw, (self.output_size, in_real), jnp.float32,
                               minval=-init_w, maxval=init_w)
        b = jax.random.uniform(kb, (self.output_size,), jnp.float32,
                               minval=-init_w, maxval=init_w)
        self.raw_last = (w.T, b)

        out_pad = _round_up(self.output_size, _LANE)
        wp = jnp.zeros((in_padded, out_pad), jnp.float32)
        wp = wp.at[:in_real, :self.output_size].set(w.T)
        bp = jnp.zeros((1, out_pad), jnp.float32)
        bp = bp.at[0, :self.output_size].set(b)
        self.last = (wp, bp)

        # One compiled dispatch per (arg-count, shape) signature.
        self._forward = jax.jit(self._forward_impl)

    def __call__(self, *args):
        return self._forward(*args)

    def _forward_impl(self, *args):
        B = args[0].shape[0]
        arg_dims = tuple(int(a.shape[1]) for a in args)
        assert sum(arg_dims) == self.input_size

        # Pad batch to a sublane multiple; pads/slices fuse under jit.
        B_pad = _round_up(max(B, 1), _SUBLANE)
        xs = []
        for a in args:
            a = a.astype(jnp.float32)
            if B_pad != B:
                a = jnp.pad(a, ((0, B_pad - B), (0, 0)))
            xs.append(a)

        # Batch tiling: big batches get 128-row tiles over a parallel grid
        # (pipelined DMA, v7x megacore sharding); small batches = one block.
        tb = 128 if (B_pad % 128 == 0) else B_pad
        grid = (B_pad // tb,)

        out_pad = self.last[0].shape[1]

        operands = list(xs)
        in_specs = [pl.BlockSpec((tb, d), lambda i: (i, 0)) for d in arg_dims]
        for w, b in self.hidden + [self.last]:
            operands += [w, b]
            # Constant index_map -> weights stay VMEM-resident across tiles.
            in_specs += [pl.BlockSpec(w.shape, lambda i: (0, 0)),
                         pl.BlockSpec(b.shape, lambda i: (0, 0))]

        kernel = functools.partial(
            _mlp_fused_kernel,
            num_args=len(args),
            arg_dims=arg_dims,
            num_hidden=len(self.hidden),
        )

        out_padded = pl.pallas_call(
            kernel,
            out_shape=jax.ShapeDtypeStruct((B_pad, out_pad), jnp.float32),
            grid_spec=pl.GridSpec(
                grid=grid,
                in_specs=in_specs,
                out_specs=pl.BlockSpec((tb, out_pad), lambda i: (i, 0)),
            ),
            # Tiny model: well under every generation's scoped-VMEM default.
            # For much larger layers, also set vmem_limit_bytes and tile the
            # feature dims (v7x has only 64 MiB physical VMEM).
            compiler_params=pltpu.CompilerParams(
                dimension_semantics=("parallel",)),
        )(*operands)

        return out_padded[:B, :self.output_size]


if __name__ == "__main__":
    key = jax.random.PRNGKey(0)
    key, k_obs, k_act, k_params = jax.random.split(key, 4)

    # Small shapes: batch=2, obs dim 8 + action dim 8, hidden [32, 32], out 4.
    batch = 2
    obs_dim, act_dim = 8, 8
    hidden = [32, 32]
    out_dim = 4

    obs = jax.random.normal(k_obs, (batch, obs_dim), jnp.float32)
    act = jax.random.normal(k_act, (batch, act_dim), jnp.float32)

    mlp = MLPPallas(obs_dim + act_dim, out_dim, layer_sizes=hidden,
                    init_w=0.003, key=k_params)

    out = mlp(obs, act)
    out = jax.block_until_ready(out)

    # Reference check in plain JAX (same unpadded params).
    h = jnp.concatenate([obs, act], axis=1)
    for w_t, b in mlp.raw_hidden:
        h = jnp.maximum(h @ w_t + b, 0.0)
    ref = h @ mlp.raw_last[0] + mlp.raw_last[1]

    assert out.shape == (batch, out_dim)
    assert jnp.allclose(out, ref, atol=1e-5, rtol=1e-5), (
        "max abs err = %e" % float(jnp.max(jnp.abs(out - ref))))

    print("KERNEL_OK")
</pallas_src>

<mosaic_0001>
module attributes {stable_mosaic.version = 11 : i64} {
  func.func @_mlp_fused_kernel(%arg0: i32, %arg1: memref<8x8xf32, #tpu.memory_space<vmem>>, %arg2: memref<8x8xf32, #tpu.memory_space<vmem>>, %arg3: memref<16x128xf32, #tpu.memory_space<vmem>>, %arg4: memref<1x128xf32, #tpu.memory_space<vmem>>, %arg5: memref<128x128xf32, #tpu.memory_space<vmem>>, %arg6: memref<1x128xf32, #tpu.memory_space<vmem>>, %arg7: memref<128x128xf32, #tpu.memory_space<vmem>>, %arg8: memref<1x128xf32, #tpu.memory_space<vmem>>, %arg9: memref<8x128xf32, #tpu.memory_space<vmem>>) attributes {dimension_semantics = [#tpu.dimension_semantics<parallel>], iteration_bounds = array<i64: 1>, scalar_prefetch = 0 : i64, scratch_operands = 0 : i64, tpu.core_type = #tpu.core_type<tc>, window_params = [{transform_indices = @transform_0, window_bounds = array<i64: 8, 8>}, {transform_indices = @transform_1, window_bounds = array<i64: 8, 8>}, {pipeline_mode = #tpu.pipeline_mode<synchronous>, transform_indices = @transform_2, window_bounds = array<i64: 16, 128>}, {pipeline_mode = #tpu.pipeline_mode<synchronous>, transform_indices = @transform_3, window_bounds = array<i64: 1, 128>}, {pipeline_mode = #tpu.pipeline_mode<synchronous>, transform_indices = @transform_4, window_bounds = array<i64: 128, 128>}, {pipeline_mode = #tpu.pipeline_mode<synchronous>, transform_indices = @transform_5, window_bounds = array<i64: 1, 128>}, {pipeline_mode = #tpu.pipeline_mode<synchronous>, transform_indices = @transform_6, window_bounds = array<i64: 128, 128>}, {pipeline_mode = #tpu.pipeline_mode<synchronous>, transform_indices = @transform_7, window_bounds = array<i64: 1, 128>}, {transform_indices = @transform_8, window_bounds = array<i64: 8, 128>}]} {
    %c0 = arith.constant 0 : index
    %c0_0 = arith.constant 0 : index
    %0 = vector.load %arg1[%c0, %c0_0] : memref<8x8xf32, #tpu.memory_space<vmem>>, vector<8x8xf32>
    %c0_1 = arith.constant 0 : index
    %c0_2 = arith.constant 0 : index
    %1 = vector.load %arg3[%c0_1, %c0_2] : memref<16x128xf32, #tpu.memory_space<vmem>>, vector<8x128xf32>
    %cst = arith.constant dense<0.000000e+00> : vector<8x128xf32>
    %2 = tpu.matmul %0, %1, %cst {dimension_numbers = #tpu.dot_dimension_numbers<[1], [0], [0], [1], [0, 0, 1, 1], [], []>} : vector<8x8xf32>, vector<8x128xf32>, vector<8x128xf32> -> vector<8x128xf32>
    %c0_3 = arith.constant 0 : index
    %c0_4 = arith.constant 0 : index
    %3 = vector.load %arg2[%c0_3, %c0_4] : memref<8x8xf32, #tpu.memory_space<vmem>>, vector<8x8xf32>
    %c8 = arith.constant 8 : index
    %c0_5 = arith.constant 0 : index
    %4 = vector.load %arg3[%c8, %c0_5] : memref<16x128xf32, #tpu.memory_space<vmem>>, vector<8x128xf32>
    %cst_6 = arith.constant dense<0.000000e+00> : vector<8x128xf32>
    %5 = tpu.matmul %3, %4, %cst_6 {dimension_numbers = #tpu.dot_dimension_numbers<[1], [0], [0], [1], [0, 0, 1, 1], [], []>} : vector<8x8xf32>, vector<8x128xf32>, vector<8x128xf32> -> vector<8x128xf32>
    %6 = arith.addf %2, %5 : vector<8x128xf32>
    %c0_7 = arith.constant 0 : index
    %c0_8 = arith.constant 0 : index
    %7 = vector.load %arg4[%c0_7, %c0_8] : memref<1x128xf32, #tpu.memory_space<vmem>>, vector<1x128xf32>
    %8 = vector.broadcast %7 : vector<1x128xf32> to vector<8x128xf32>
    %9 = arith.addf %6, %8 : vector<8x128xf32>
    %cst_9 = arith.constant 0.000000e+00 : f32
    %10 = vector.broadcast %cst_9 : f32 to vector<8x128xf32>
    %11 = arith.maximumf %9, %10 : vector<8x128xf32>
    %c0_10 = arith.constant 0 : index
    %c0_11 = arith.constant 0 : index
    %12 = vector.load %arg5[%c0_10, %c0_11] : memref<128x128xf32, #tpu.memory_space<vmem>>, vector<128x128xf32>
    %cst_12 = arith.constant dense<0.000000e+00> : vector<8x128xf32>
    %13 = tpu.matmul %11, %12, %cst_12 {dimension_numbers = #tpu.dot_dimension_numbers<[1], [0], [0], [1], [0, 0, 1, 1], [], []>} : vector<8x128xf32>, vector<128x128xf32>, vector<8x128xf32> -> vector<8x128xf32>
    %c0_13 = arith.constant 0 : index
    %c0_14 = arith.constant 0 : index
    %14 = vector.load %arg6[%c0_13, %c0_14] : memref<1x128xf32, #tpu.memory_space<vmem>>, vector<1x128xf32>
    %15 = vector.broadcast %14 : vector<1x128xf32> to vector<8x128xf32>
    %16 = arith.addf %13, %15 : vector<8x128xf32>
    %cst_15 = arith.constant 0.000000e+00 : f32
    %17 = vector.broadcast %cst_15 : f32 to vector<8x128xf32>
    %18 = arith.maximumf %16, %17 : vector<8x128xf32>
    %c0_16 = arith.constant 0 : index
    %c0_17 = arith.constant 0 : index
    %19 = vector.load %arg7[%c0_16, %c0_17] : memref<128x128xf32, #tpu.memory_space<vmem>>, vector<128x128xf32>
    %cst_18 = arith.constant dense<0.000000e+00> : vector<8x128xf32>
    %20 = tpu.matmul %18, %19, %cst_18 {dimension_numbers = #tpu.dot_dimension_numbers<[1], [0], [0], [1], [0, 0, 1, 1], [], []>} : vector<8x128xf32>, vector<128x128xf32>, vector<8x128xf32> -> vector<8x128xf32>
    %c0_19 = arith.constant 0 : index
    %c0_20 = arith.constant 0 : index
    %21 = vector.load %arg8[%c0_19, %c0_20] : memref<1x128xf32, #tpu.memory_space<vmem>>, vector<1x128xf32>
    %22 = vector.broadcast %21 : vector<1x128xf32> to vector<8x128xf32>
    %23 = arith.addf %20, %22 : vector<8x128xf32>
    %c0_21 = arith.constant 0 : index
    %c0_22 = arith.constant 0 : index
    %24 = vector.load %arg9[%c0_21, %c0_22] : memref<8x128xf32, #tpu.memory_space<vmem>>, vector<8x128xf32>
    tpu.vector_store %arg9[%c0_21, %c0_22], %23 {strides = array<i32>} : memref<8x128xf32, #tpu.memory_space<vmem>>, vector<8x128xf32>,
    return
  }
  func.func @transform_0(%arg0: i32) -> (i32, i32) {
    %c0_i32 = arith.constant 0 : i32
    %c0_i32_0 = arith.constant 0 : i32
    return %arg0, %c0_i32 : i32, i32
  }
  func.func @transform_1(%arg0: i32) -> (i32, i32) {
    %c0_i32 = arith.constant 0 : i32
    %c0_i32_0 = arith.constant 0 : i32
    return %arg0, %c0_i32 : i32, i32
  }
  func.func @transform_2(%arg0: i32) -> (i32, i32) {
    %c0_i32 = arith.constant 0 : i32
    %c0_i32_0 = arith.constant 0 : i32
    %c0_i32_1 = arith.constant 0 : i32
    return %c0_i32, %c0_i32_0 : i32, i32
  }
  func.func @transform_3(%arg0: i32) -> (i32, i32) {
    %c0_i32 = arith.constant 0 : i32
    %c0_i32_0 = arith.constant 0 : i32
    %c0_i32_1 = arith.constant 0 : i32
    return %c0_i32, %c0_i32_0 : i32, i32
  }
  func.func @transform_4(%arg0: i32) -> (i32, i32) {
    %c0_i32 = arith.constant 0 : i32
    %c0_i32_0 = arith.constant 0 : i32
    %c0_i32_1 = arith.constant 0 : i32
    return %c0_i32, %c0_i32_0 : i32, i32
  }
  func.func @transform_5(%arg0: i32) -> (i32, i32) {
    %c0_i32 = arith.constant 0 : i32
    %c0_i32_0 = arith.constant 0 : i32
    %c0_i32_1 = arith.constant 0 : i32
    return %c0_i32, %c0_i32_0 : i32, i32
  }
  func.func @transform_6(%arg0: i32) -> (i32, i32) {
    %c0_i32 = arith.constant 0 : i32
    %c0_i32_0 = arith.constant 0 : i32
    %c0_i32_1 = arith.constant 0 : i32
    return %c0_i32, %c0_i32_0 : i32, i32
  }
  func.func @transform_7(%arg0: i32) -> (i32, i32) {
    %c0_i32 = arith.constant 0 : i32
    %c0_i32_0 = arith.constant 0 : i32
    %c0_i32_1 = arith.constant 0 : i32
    return %c0_i32, %c0_i32_0 : i32, i32
  }
  func.func @transform_8(%arg0: i32) -> (i32, i32) {
    %c0_i32 = arith.constant 0 : i32
    %c0_i32_0 = arith.constant 0 : i32
    return %arg0, %c0_i32 : i32, i32
  }
}

</mosaic_0001>

<bundles_post_ra>
// kernel: _forward_impl.1
= control target key start
LH: loop header
LB: loop body
LE: loop exit
PB: predicated region body
PF: predicated region fallthrough
CT: control target
= control target key end

     0   :  { %13 = vsyncpa [#allocation3], 0  ;;  %s707_s0 = inlined_call_operand.vmem [shape: f32[8,8], index: 0, kind: input, shape index: {}]   ;;  %s708_s1 = inlined_call_operand.vmem [shape: f32[8,8], index: 1, kind: input, shape index: {}]   ;;  %s709_s2 = inlined_call_operand.vmem [shape: f32[16,128], index: 2, kind: input, shape index: {}]   ;;  %s710_s3 = inlined_call_operand.vmem [shape: f32[1,128], index: 3, kind: input, shape index: {}]   ;;  %s711_s4 = inlined_call_operand.hbm [shape: f32[128,128], index: 4, kind: input, shape index: {}]   ;;  %s712_s5 = inlined_call_operand.vmem [shape: f32[1,128], index: 5, kind: input, shape index: {}]   ;;  %s713_s6 = inlined_call_operand.hbm [shape: f32[128,128], index: 6, kind: input, shape index: {}]   ;;  %s714_s7 = inlined_call_operand.vmem [shape: f32[1,128], index: 7, kind: input, shape index: {}]   ;;  %s715_s8 = inlined_call_operand.vmem [shape: f32[8,128], index: 8, kind: output, shape index: {}]  }
   0x1   :  { %14 = vsyncpa [#allocation5], 0  ;;  %s584_s27 = smov [#allocation2]  }
   0x2   :  { %s28_s28 = sshll.u32 %s584_s27, 4  ;;  %s29_s28 = int_to_ptr.vmem [resolvable:$true] %s28_s28 }
   0x3   :  { %s548_s29 = scalar_lea.vmem %s29_s28, 2048  ;;  %p553_p1 = scmp.lt.s32.totalorder %s29_s28, %s29_s28 }
   0x4   :  { %p549_p0 = scmp.ne.s32.totalorder %s29_s28, %s548_s29  ;;  %p554_p2 = scmp.lt.s32.totalorder %s548_s29, %s548_s29 }
   0x6   :  { %p555_p3 = por %p554_p2, %p553_p1 }
   0x8   :  { %p556_p4 = pnand %p555_p3, %p549_p0 }
   0xa   :  { %559 = shalt.err (!%p556_p4)
}
   0xb   :  { %s585_s30 = smov 128   ;;  %s586_s9 = smov 8  }
   0xc   :  { %34 = dma.hbm_to_vmem [thread:$0]  %s711_s4, 2048, %s29_s28, [#allocation3], %s585_s30, %s585_s30, %s586_s9  }
   0xd   :  { %s587_s12 = smov [#allocation4]  }
   0xe   :  { %s42_s13 = sshll.u32 %s587_s12, 4  ;;  %s43_s13 = int_to_ptr.vmem [resolvable:$true] %s42_s13 }
   0xf   :  { %s568_s14 = scalar_lea.vmem %s43_s13, 2048  ;;  %p573_p6 = scmp.lt.s32.totalorder %s43_s13, %s43_s13 }
  0x10   :  { %p569_p5 = scmp.ne.s32.totalorder %s43_s13, %s568_s14  ;;  %p574_p7 = scmp.lt.s32.totalorder %s568_s14, %s568_s14 }
  0x12   :  { %p575_p8 = por %p574_p7, %p573_p6 }
  0x14   :  { %p576_p9 = pnand %p575_p8, %p569_p5 }
  0x16   :  { %579 = shalt.err (!%p576_p9)
}
  0x17   :  { %48 = dma.hbm_to_vmem [thread:$0]  %s713_s6, 2048, %s43_s13, [#allocation5], %s585_s30, %s585_s30, %s586_s9  }
  0x18   :  { %580 = dma.done.wait [#allocation3], 2048  }
  0x19   :  { %581 = vsyncadd [#allocation3], 4294965248 }
  0x1a   :  { %582 = dma.done.wait [#allocation5], 2048  }
  0x1b   :  { %583 = vsyncadd [#allocation5], 4294965248  ;;  %v588_v0 = vmov 0.0   ;;  %vm589_vm0 = vmmov 0   ;;  %vm61_vm1 = vcmask 64512   ;;  %v60_v1 = vld [vmem:[%s709_s2 + $0x8] sm:$0xff] }
  0x1c   :  { %454 = vmatprep.subr.mxu0 %v588_v0  ;;  %459 = vmatprep.subr.mxu1 %v588_v0  ;;  %v58_v2 = vld [vmem:[%s709_s2] sm:$0xff]  ;;  %v232_v5 = vld [vmem:[#allocation2 + $0x78] sm:$0xff]  ;;  %v231_v6 = vld [vmem:[#allocation2 + $0x70] sm:$0xff] }
  0x1d   :  { %456 = vmatprep.mubr.msk.f32.mxu0 %vm589_vm0, %v588_v0  ;;  %461 = vmatprep.mubr.msk.f32.mxu1 %vm589_vm0, %v588_v0  ;;  %v59_v3 = vld [vmem:[%s708_s1] sm:$0xff]  ;;  %v230_v7 = vld [vmem:[#allocation2 + $0x68] sm:$0xff]  ;;  %v228_v9 = vld [vmem:[#allocation2 + $0x58] sm:$0xff] }
  0x1e   :  { %455 = vmatpush3.msra.mxu0 %v60_v1  ;;  %460 = vmatpush3.msra.mxu1 %v58_v2  ;;  %v57_v4 = vld [vmem:[%s707_s0] sm:$0xff]  ;;  %v227_v10 = vld [vmem:[#allocation2 + $0x50] sm:$0xff]  ;;  %v226_v11 = vld [vmem:[#allocation2 + $0x48] sm:$0xff] }
  0x1f   :  { %457 = vmatmul.mubr.msk.f32.vlgmr.msra.gmra.mxu0 %vm61_vm1, %v59_v3  ;;  %462 = vmatmul.mubr.msk.f32.vlgmr.msra.gmra.mxu1 %vm61_vm1, %v57_v4  ;;  %v229_v8 = vld [vmem:[#allocation2 + $0x60] sm:$0xff]  ;;  %v224_v13 = vld [vmem:[#allocation2 + $0x38] sm:$0xff]  ;;  %v223_v14 = vld [vmem:[#allocation2 + $0x30] sm:$0xff] }
  0x20   :  { %464 = vmatprep.subr.mxu0 %v588_v0  ;;  %496 = vmatprep.mubr.msk.f32.mxu0 %vm589_vm0, %v588_v0  ;;  %v225_v12 = vld [vmem:[#allocation2 + $0x40] sm:$0xff]  ;;  %v222_v15 = vld [vmem:[#allocation2 + $0x28] sm:$0xff]  ;;  %v220_v17 = vld [vmem:[#allocation2 + $0x18] sm:$0xff] }
  0x21   :  { %465 = vmatpush3.msra.mxu0 %v232_v5  ;;  %499 = vmatprep.subr.mxu1 %v588_v0  ;;  %v221_v16 = vld [vmem:[#allocation2 + $0x20] sm:$0xff]  ;;  %v219_v18 = vld [vmem:[#allocation2 + $0x10] sm:$0xff]  ;;  %v218_v19 = vld [vmem:[#allocation2 + $0x8] sm:$0xff] }
  0x22   :  { %466 = vmatprep.subr.mxu0 %v588_v0  ;;  %531 = vmatprep.mubr.msk.f32.mxu1 %vm589_vm0, %v588_v0  ;;  %v217_v20 = vld [vmem:[#allocation2] sm:$0xff]  ;;  %v326_v21 = vld [vmem:[#allocation4 + $0x78] sm:$0xff]  ;;  %v325_v22 = vld [vmem:[#allocation4 + $0x70] sm:$0xff] }
  0x23   :  { %467 = vmatpush3.msra.mxu0 %v231_v6  ;;  %500 = vmatpush3.msra.mxu1 %v326_v21  ;;  %v324_v23 = vld [vmem:[#allocation4 + $0x68] sm:$0xff]  ;;  %v323_v24 = vld [vmem:[#allocation4 + $0x60] sm:$0xff]  ;;  %v322_v25 = vld [vmem:[#allocation4 + $0x58] sm:$0xff] }
  0x24   :  { %468 = vmatprep.subr.mxu0 %v588_v0  ;;  %501 = vmatprep.subr.mxu1 %v588_v0  ;;  %v321_v26 = vld [vmem:[#allocation4 + $0x50] sm:$0xff]  ;;  %v320_v27 = vld [vmem:[#allocation4 + $0x48] sm:$0xff]  ;;  %v319_v28 = vld [vmem:[#allocation4 + $0x40] sm:$0xff] }
  0x25   :  { %469 = vmatpush3.msra.mxu0 %v230_v7  ;;  %502 = vmatpush3.msra.mxu1 %v325_v22  ;;  %v318_v29 = vld [vmem:[#allocation4 + $0x38] sm:$0xff]  ;;  %v317_v30 = vld [vmem:[#allocation4 + $0x30] sm:$0xff]  ;;  %v316_v31 = vld [vmem:[#allocation4 + $0x28] sm:$0xff] }
  0x26   :  { %470 = vmatprep.subr.mxu0 %v588_v0  ;;  %503 = vmatprep.subr.mxu1 %v588_v0  ;;  %v315_v32 = vld [vmem:[#allocation4 + $0x20] sm:$0xff]  ;;  %v314_v33 = vld [vmem:[#allocation4 + $0x18] sm:$0xff]  ;;  %v313_v42 = vld [vmem:[#allocation4 + $0x10] sm:$0xff] }
  0x27   :  { %471 = vmatpush3.msra.mxu0 %v229_v8  ;;  %504 = vmatpush3.msra.mxu1 %v324_v23  ;;  %v413_v36 = vld [vmem:[%s710_s3] ss:$0 sm:$0xff]  ;;  %v312_v43 = vld [vmem:[#allocation4 + $0x8] sm:$0xff] }
  0x28   :  { %472 = vmatprep.subr.mxu0 %v588_v0  ;;  %505 = vmatprep.subr.mxu1 %v588_v0  ;;  %v311_v44 = vld [vmem:[#allocation4] sm:$0xff] }
  0x29   :  { %473 = vmatpush3.msra.mxu0 %v228_v9  ;;  %506 = vmatpush3.msra.mxu1 %v323_v24  ;;  %v414_v45 = vld [vmem:[%s712_s5] ss:$0 sm:$0xff] }
  0x2a   :  { %474 = vmatprep.subr.mxu0 %v588_v0  ;;  %507 = vmatprep.subr.mxu1 %v588_v0  ;;  %v415_v50 = vld [vmem:[%s714_s7] ss:$0 sm:$0xff] }
  0x2b   :  { %475 = vmatpush3.msra.mxu0 %v227_v10  ;;  %508 = vmatpush3.msra.mxu1 %v322_v25 }
  0x2c   :  { %476 = vmatprep.subr.mxu0 %v588_v0  ;;  %509 = vmatprep.subr.mxu1 %v588_v0 }
  0x2d   :  { %477 = vmatpush3.msra.mxu0 %v226_v11  ;;  %510 = vmatpush3.msra.mxu1 %v321_v26 }
  0x2e   :  { %478 = vmatprep.subr.mxu0 %v588_v0  ;;  %511 = vmatprep.subr.mxu1 %v588_v0 }
  0x2f   :  { %479 = vmatpush3.msra.mxu0 %v225_v12  ;;  %512 = vmatpush3.msra.mxu1 %v320_v27 }
  0x30   :  { %480 = vmatprep.subr.mxu0 %v588_v0  ;;  %513 = vmatprep.subr.mxu1 %v588_v0 }
  0x31   :  { %481 = vmatpush3.msra.mxu0 %v224_v13  ;;  %514 = vmatpush3.msra.mxu1 %v319_v28 }
  0x32   :  { %482 = vmatprep.subr.mxu0 %v588_v0  ;;  %515 = vmatprep.subr.mxu1 %v588_v0 }
  0x33   :  { %483 = vmatpush3.msra.mxu0 %v223_v14  ;;  %516 = vmatpush3.msra.mxu1 %v318_v29 }
  0x34   :  { %484 = vmatprep.subr.mxu0 %v588_v0  ;;  %517 = vmatprep.subr.mxu1 %v588_v0 }
  0x35   :  { %485 = vmatpush3.msra.mxu0 %v222_v15  ;;  %518 = vmatpush3.msra.mxu1 %v317_v30 }
  0x36   :  { %486 = vmatprep.subr.mxu0 %v588_v0  ;;  %519 = vmatprep.subr.mxu1 %v588_v0 }
  0x37   :  { %487 = vmatpush3.msra.mxu0 %v221_v16  ;;  %520 = vmatpush3.msra.mxu1 %v316_v31 }
  0x38   :  { %488 = vmatprep.subr.mxu0 %v588_v0  ;;  %521 = vmatprep.subr.mxu1 %v588_v0 }
  0x39   :  { %489 = vmatpush3.msra.mxu0 %v220_v17  ;;  %522 = vmatpush3.msra.mxu1 %v315_v32 }
  0x3a   :  { %490 = vmatprep.subr.mxu0 %v588_v0  ;;  %523 = vmatprep.subr.mxu1 %v588_v0 }
  0x3b   :  { %491 = vmatpush3.msra.mxu0 %v219_v18  ;;  %524 = vmatpush3.msra.mxu1 %v314_v33 }
  0x3c   :  { %492 = vmatprep.subr.mxu0 %v588_v0  ;;  %525 = vmatprep.subr.mxu1 %v588_v0 }
  0x3d   :  { %493 = vmatpush3.msra.mxu0 %v218_v19  ;;  %526 = vmatpush3.msra.mxu1 %v313_v42 }
  0x3e   :  { %494 = vmatprep.subr.mxu0 %v588_v0  ;;  %527 = vmatprep.subr.mxu1 %v588_v0 }
  0x3f   :  { %495 = vmatpush3.msra.mxu0 %v217_v20  ;;  %528 = vmatpush3.msra.mxu1 %v312_v43 }
  0x40   :  { %529 = vmatprep.subr.mxu1 %v588_v0 }
  0x41   :  { %530 = vmatpush3.msra.mxu1 %v311_v44 }
  0xdf   :  { %v131_v34 = vpop.f32.mrf.mxu0  ;;  %v204_v35 = vpop.f32.mrf.mxu1 }
  0xe0   :  { %v205_v37 = vadd.f32 %v204_v35, %v131_v34 }
  0xe1   :  { %v458_v38 = vpop.f32.mrf.mxu0  ;;  %v463_v39 = vpop.f32.mrf.mxu1 }
  0xe2   :  { %v215_v40 = vadd.f32 %v413_v36, %v205_v37 }
  0xe4   :  { %v216_v41 = vmax.f32 %v215_v40, 0.0 }
  0xe6   :  { %497 = vmatmul.mubr.f32.vlgmr.msra.gmra.mxu0 %v216_v41 }
 0x1a6   :  { %v306_v46 = vpop.f32.mrf.mxu0 }
 0x1a7   :  { %v307_v47 = vadd.f32 %v414_v45, %v306_v46 }
 0x1a8   :  { %v498_v48 = vpop.f32.mrf.mxu0 }
 0x1a9   :  { %v310_v49 = vmax.f32 %v307_v47, 0.0 }
 0x1ab   :  { %532 = vmatmul.mubr.f32.vlgmr.msra.gmra.mxu1 %v310_v49 }
 0x26b   :  { %v400_v51 = vpop.f32.mrf.mxu1 }
 0x26c   :  { %v401_v52 = vadd.f32 %v415_v50, %v400_v51 }
 0x26d   :  { %v533_v53 = vpop.f32.mrf.mxu1 }
 0x26e   :  { %404 = vst [vmem:[%s715_s8] sm:$0xff] %v401_v52 }
 0x26f   :  { %409 = vsyncpa [#allocation3], 1 }
 0x270   :  { %410 = vsyncpa [#allocation5], 1 }

</bundles_post_ra>
